<compile_context>
chip_gen: v5e
topology: v5e:2x2
jax: 0.10.0
libtpu: 0.0.40
codegen_flags: <defaults>
</compile_context>

<pallas_src>
import jax
import jax.numpy as jnp
from jax.experimental import pallas as pl
from jax.experimental.pallas import tpu as pltpu


def _round_up(x, m):
    return (x + m - 1) // m * m


def _round_down(x, m):
    return x // m * m


# ---------------------------------------------------------------------------
# Kernels
# ---------------------------------------------------------------------------

def _residual_kernel_resident(x_ref, w_ref, b_ref, o_ref):
    # x_ref: (tm, Dp) input dtype, w_ref: (Dp, Dp) bf16, b_ref: (1, Dp) f32,
    # o_ref: (tm, Dp) input dtype.
    x = x_ref[...]
    # bf16 operands into the MXU, f32 accumulation.
    h = jnp.dot(x.astype(jnp.bfloat16), w_ref[...],
                preferred_element_type=jnp.float32)
    h = h + b_ref[...]                       # f32 bias, broadcast over rows
    # TODO(synk): PyTorch nn.GELU defaults to exact erf; the tanh
    # approximation is used here (fn is an arbitrary callable in ResidualAdd).
    h = jax.nn.gelu(h)
    # Residual add in f32 from the original-precision x; cast only at store.
    o_ref[...] = (h + x.astype(jnp.float32)).astype(o_ref.dtype)


def _residual_kernel_coltiled(x_ref, xres_ref, w_ref, b_ref, o_ref):
    # x_ref: (tm, Dp) full-K block (reused across the inner N axis),
    # xres_ref: (tm, tn) residual columns, w_ref: (Dp, tn) bf16,
    # b_ref: (1, tn) f32, o_ref: (tm, tn).
    h = jnp.dot(x_ref[...].astype(jnp.bfloat16), w_ref[...],
                preferred_element_type=jnp.float32)
    h = h + b_ref[...]
    h = jax.nn.gelu(h)
    o_ref[...] = (h + xres_ref[...].astype(jnp.float32)).astype(o_ref.dtype)


# ---------------------------------------------------------------------------
# Wrapper
# ---------------------------------------------------------------------------

def _vmem_capacity_bytes():
    """Per-core VMEM capacity, with safe fallbacks."""
    try:
        info = pltpu.get_tpu_info()
        cap = getattr(info, "vmem_capacity_bytes", None)
        if cap:
            return int(cap)
    except Exception:
        pass
    try:
        kind = jax.devices()[0].device_kind.lower()
        if any(t in kind for t in ("v4", "v5", "v6")):
            return 128 << 20
    except Exception:
        pass
    return 64 << 20          # conservative default (v7x-sized)


def residual_add(x, w, b):
    """y = gelu(x @ w + b) + x, fused in one Pallas TPU kernel.

    x: (B, S, D); w: (D, D); b: (D,).  The MXU sees bf16 operands with f32
    accumulation; bias/GELU/residual stay in f32; output keeps x.dtype.
    """
    B, S, D = x.shape
    M = B * S
    out_dtype = x.dtype
    x_item = x.dtype.itemsize
    sub = 16 if x_item == 2 else 8          # sublane multiple for x/out blocks

    # Lane-dense last dim (multiple of 128) -> unmasked vst on the output.
    Dp = _round_up(D, 128)

    # ---- per-generation VMEM budget --------------------------------------
    cap = _vmem_capacity_bytes()
    if cap >= (128 << 20):                  # v5e / v6e: 128 MiB VMEM per core
        budget = 88 << 20
        vmem_limit_cap = 100 << 20
        tm_cap = 2048                       # use the headroom for bigger tiles
    else:                                   # v7x: 64 MiB per core (or smaller)
        budget = min(28 << 20, int(cap * 0.45))
        vmem_limit_cap = min(36 << 20, int(cap * 0.60))
        tm_cap = 1024

    # ---- weight residency / column tiling ---------------------------------
    w_bytes = Dp * Dp * 2                   # single resident bf16 weight copy
    resident = w_bytes <= int(budget * 0.4)
    if resident:
        tn = Dp
    else:
        # Stream the weight in (Dp, tn) column blocks; tn must divide Dp and
        # be a multiple of 128.
        tn_max = max(128, _round_down((budget // 3) // (2 * Dp * 2), 128))
        tn = 128
        t = min(_round_down(tn_max, 128), Dp)
        while t >= 128:
            if Dp % t == 0:
                tn = t
                break
            t -= 128
    w_bufs = 1 if resident else 2           # invariant weight -> single buffer

    def _vmem_bytes(tm_):
        xres = 0 if resident else 2 * tm_ * tn * x_item
        return (2 * tm_ * Dp * x_item       # x full-K blocks (double-buffered)
                + xres                      # residual-view blocks (col-tiled)
                + 2 * tm_ * tn * x_item     # output blocks (double-buffered)
                + w_bufs * Dp * tn * 2      # bf16 weight block(s)
                + w_bufs * 8 * tn * 4       # bias tiles (sublane-padded)
                + tm_ * Dp * 2              # in-kernel bf16 copy of x
                + 3 * tm_ * tn * 4)         # h + GELU temps + f32 residual

    # ---- row tile selection ------------------------------------------------
    Mp0 = _round_up(M, sub)                 # minimal sublane padding of M

    tm = _round_up(min(tm_cap, Mp0), sub)
    while _vmem_bytes(tm) > budget and tm > sub:
        tm = max(_round_up(tm // 2, sub), sub)

    # Megacore: keep >= 2 steps on the parallel M axis so both v7x
    # TensorCores get work; harmless on single-TC parts.
    if Mp0 >= 2 * sub:
        tm = min(tm, max(sub, _round_down(Mp0 // 2, sub)))

    # Prefer a tm that divides the sublane-padded M (no full jnp.pad copy of
    # x / slice copy of y); fall back to padding M up to tm only if the
    # nearest divisor is more than 2x smaller than the target tile.
    t = tm
    tm_div = sub
    while t >= sub:
        if Mp0 % t == 0:
            tm_div = t
            break
        t -= sub
    if 2 * tm_div >= tm:
        tm = tm_div
        Mp = Mp0
    else:
        Mp = _round_up(M, tm)

    # ---- operand preparation (zero padding is inert; sliced off below) ----
    x2 = x.reshape(M, D)
    if (Mp, Dp) != (M, D):
        x2 = jnp.pad(x2, ((0, Mp - M), (0, Dp - D)))
    wp = jnp.pad(w, ((0, Dp - D), (0, Dp - D))) if Dp != D else w
    wp = wp.astype(jnp.bfloat16)                        # bf16 MXU operand
    b2 = (jnp.pad(b, ((0, Dp - D),)) if Dp != D else b)
    b2 = b2.astype(jnp.float32).reshape(1, Dp)          # bias stays f32

    est = _vmem_bytes(tm)
    vmem_limit = int(min(max(est + (4 << 20), 20 << 20), vmem_limit_cap))
    if vmem_limit < est + (2 << 20):        # pathological huge-D fallback
        vmem_limit = int(min(est + (4 << 20), (cap * 3) // 4))

    # ---- pallas_call --------------------------------------------------------
    if resident:
        grid = (Mp // tm,)
        in_specs = [
            pl.BlockSpec((tm, Dp), lambda i: (i, 0)),            # x row tile
            pl.BlockSpec((Dp, Dp), lambda i: (0, 0),
                         pipeline_mode=pl.Buffered(1)),          # resident W
            pl.BlockSpec((1, Dp), lambda i: (0, 0),
                         pipeline_mode=pl.Buffered(1)),          # resident b
        ]
        out_specs = pl.BlockSpec((tm, Dp), lambda i: (i, 0))
        dims = ("parallel",)
        kernel = _residual_kernel_resident
        operands = (x2, wp, b2)
    else:
        grid = (Mp // tm, Dp // tn)
        in_specs = [
            pl.BlockSpec((tm, Dp), lambda i, j: (i, 0)),  # full-K x (reused over j)
            pl.BlockSpec((tm, tn), lambda i, j: (i, j)),  # residual columns of x
            pl.BlockSpec((Dp, tn), lambda i, j: (0, j)),  # weight column block
            pl.BlockSpec((1, tn), lambda i, j: (0, j)),   # bias column block
        ]
        out_specs = pl.BlockSpec((tm, tn), lambda i, j: (i, j))
        dims = ("parallel", "parallel")
        kernel = _residual_kernel_coltiled
        operands = (x2, x2, wp, b2)

    yp = pl.pallas_call(
        kernel,
        out_shape=jax.ShapeDtypeStruct((Mp, Dp), out_dtype),
        grid=grid,
        in_specs=in_specs,
        out_specs=out_specs,
        compiler_params=pltpu.CompilerParams(
            dimension_semantics=dims,
            vmem_limit_bytes=vmem_limit,
        ),
    )(*operands)

    y = yp if (Mp, Dp) == (M, D) else yp[:M, :D]
    return y.reshape(B, S, D)


def residual_add_ref(x, w, b):
    # Pure-JAX reference matching the kernel numerics (bf16 MXU operands,
    # f32 accumulation / elementwise tail, tanh-approx GELU, f32 residual).
    h = jnp.dot(x.astype(jnp.bfloat16), w.astype(jnp.bfloat16),
                preferred_element_type=jnp.float32)
    h = jax.nn.gelu(h + b.astype(jnp.float32))
    return (h + x.astype(jnp.float32)).astype(x.dtype)


if __name__ == "__main__":
    # TODO(synk): `fn` in ResidualAdd is a generic callable; a fixed
    # Linear(D->D)+GELU is used as a concrete deterministic instantiation.
    key = jax.random.PRNGKey(0)
    kx, kw, kb = jax.random.split(key, 3)

    B, S, D = 2, 8, 32
    x = jax.random.normal(kx, (B, S, D), dtype=jnp.float32)
    w = jax.random.normal(kw, (D, D), dtype=jnp.float32) * (1.0 / jnp.sqrt(D))
    b = jax.random.normal(kb, (D,), dtype=jnp.float32) * 0.01

    y = jax.block_until_ready(residual_add(x, w, b))
    y_ref = residual_add_ref(x, w, b)

    assert y.shape == (B, S, D)
    assert jnp.allclose(y, y_ref, atol=1e-2, rtol=1e-2), "mismatch vs reference"

    print("KERNEL_OK")
</pallas_src>

<mosaic_0001>
module attributes {stable_mosaic.version = 11 : i64} {
  func.func @_residual_kernel_resident(%arg0: i32, %arg1: memref<8x128xf32, #tpu.memory_space<vmem>>, %arg2: memref<128x128xbf16, #tpu.memory_space<vmem>>, %arg3: memref<1x128xf32, #tpu.memory_space<vmem>>, %arg4: memref<8x128xf32, #tpu.memory_space<vmem>>) attributes {dimension_semantics = [#tpu.dimension_semantics<parallel>], iteration_bounds = array<i64: 2>, scalar_prefetch = 0 : i64, scratch_operands = 0 : i64, tpu.core_type = #tpu.core_type<tc>, window_params = [{transform_indices = @transform_0, window_bounds = array<i64: 8, 128>}, {pipeline_mode = #tpu.pipeline_mode<synchronous>, transform_indices = @transform_1, window_bounds = array<i64: 128, 128>}, {pipeline_mode = #tpu.pipeline_mode<synchronous>, transform_indices = @transform_2, window_bounds = array<i64: 1, 128>}, {transform_indices = @transform_3, window_bounds = array<i64: 8, 128>}]} {
    %c0 = arith.constant 0 : index
    %c0_0 = arith.constant 0 : index
    %0 = vector.load %arg1[%c0, %c0_0] : memref<8x128xf32, #tpu.memory_space<vmem>>, vector<8x128xf32>
    %1 = arith.truncf %0 : vector<8x128xf32> to vector<8x128xbf16>
    %c0_1 = arith.constant 0 : index
    %c0_2 = arith.constant 0 : index
    %2 = vector.load %arg2[%c0_1, %c0_2] : memref<128x128xbf16, #tpu.memory_space<vmem>>, vector<128x128xbf16>
    %cst = arith.constant dense<0.000000e+00> : vector<8x128xf32>
    %3 = tpu.matmul %1, %2, %cst {dimension_numbers = #tpu.dot_dimension_numbers<[1], [0], [0], [1], [0, 0, 1, 1], [], []>} : vector<8x128xbf16>, vector<128x128xbf16>, vector<8x128xf32> -> vector<8x128xf32>
    %c0_3 = arith.constant 0 : index
    %c0_4 = arith.constant 0 : index
    %4 = vector.load %arg3[%c0_3, %c0_4] : memref<1x128xf32, #tpu.memory_space<vmem>>, vector<1x128xf32>
    %5 = vector.broadcast %4 : vector<1x128xf32> to vector<8x128xf32>
    %6 = arith.addf %3, %5 : vector<8x128xf32>
    %7 = arith.mulf %6, %6 : vector<8x128xf32>
    %8 = arith.mulf %6, %7 : vector<8x128xf32>
    %cst_5 = arith.constant 4.471500e-02 : f32
    %9 = vector.broadcast %cst_5 : f32 to vector<8x128xf32>
    %10 = arith.mulf %9, %8 : vector<8x128xf32>
    %11 = arith.addf %6, %10 : vector<8x128xf32>
    %cst_6 = arith.constant 0.797884583 : f32
    %12 = vector.broadcast %cst_6 : f32 to vector<8x128xf32>
    %13 = arith.mulf %12, %11 : vector<8x128xf32>
    %14 = math.tanh %13 : vector<8x128xf32>
    %cst_7 = arith.constant 1.000000e+00 : f32
    %15 = vector.broadcast %cst_7 : f32 to vector<8x128xf32>
    %16 = arith.addf %15, %14 : vector<8x128xf32>
    %cst_8 = arith.constant 5.000000e-01 : f32
    %17 = vector.broadcast %cst_8 : f32 to vector<8x128xf32>
    %18 = arith.mulf %17, %16 : vector<8x128xf32>
    %19 = arith.mulf %6, %18 : vector<8x128xf32>
    %20 = arith.addf %19, %0 : vector<8x128xf32>
    %c0_9 = arith.constant 0 : index
    %c0_10 = arith.constant 0 : index
    %21 = vector.load %arg4[%c0_9, %c0_10] : memref<8x128xf32, #tpu.memory_space<vmem>>, vector<8x128xf32>
    tpu.vector_store %arg4[%c0_9, %c0_10], %20 {strides = array<i32>} : memref<8x128xf32, #tpu.memory_space<vmem>>, vector<8x128xf32>,
    return
  }
  func.func @transform_0(%arg0: i32) -> (i32, i32) {
    %c0_i32 = arith.constant 0 : i32
    %c0_i32_0 = arith.constant 0 : i32
    return %arg0, %c0_i32 : i32, i32
  }
  func.func @transform_1(%arg0: i32) -> (i32, i32) {
    %c0_i32 = arith.constant 0 : i32
    %c0_i32_0 = arith.constant 0 : i32
    %c0_i32_1 = arith.constant 0 : i32
    return %c0_i32, %c0_i32_0 : i32, i32
  }
  func.func @transform_2(%arg0: i32) -> (i32, i32) {
    %c0_i32 = arith.constant 0 : i32
    %c0_i32_0 = arith.constant 0 : i32
    %c0_i32_1 = arith.constant 0 : i32
    return %c0_i32, %c0_i32_0 : i32, i32
  }
  func.func @transform_3(%arg0: i32) -> (i32, i32) {
    %c0_i32 = arith.constant 0 : i32
    %c0_i32_0 = arith.constant 0 : i32
    return %arg0, %c0_i32 : i32, i32
  }
}

</mosaic_0001>

<bundles_post_ra>
// kernel: tpu_custom_call.1
= control target key start
LH: loop header
LB: loop body
LE: loop exit
PB: predicated region body
PF: predicated region fallthrough
CT: control target
= control target key end

     0   :  { %8 = vsyncpa [#allocation3], 0  ;;  %s809_s0 = inlined_call_operand.hbm [shape: f32[16,128], index: 0, kind: input, shape index: {}]   ;;  %s810_s1 = inlined_call_operand.hbm [shape: bf16[128,128], index: 1, kind: input, shape index: {}]   ;;  %s811_s2 = inlined_call_operand.vmem [shape: f32[1,128], index: 2, kind: input, shape index: {}]   ;;  %s812_s3 = inlined_call_operand.hbm [shape: f32[16,128], index: 3, kind: output, shape index: {}]  }
   0x1   :  { %10 = vsyncpa [#allocation3 + $0x1], 0 }
   0x2   :  { %11 = vsyncpa [#allocation6], 0 }
   0x3   :  { %12 = vsyncpa [#allocation4], 0 }
   0x4   :  { %14 = vsyncpa [#allocation4 + $0x1], 0  ;;  %s666_s12 = smov 0   ;;  %s668_s13 = smov 0  }
   0x5   :  { %s670_s14 = smov 0   ;;  %s672_s15 = smov 0  }
   0x6 LB: > { %s130_s18 = sshll.u32 %s810_s1, 4  ;;  %s690_s19 = sadd.s32 4294967295, %s641_s15   ;;  %s641_s15 = sphi %s672_s15, %s822_s15   ;;  %s637_s14 = sphi %s670_s14, %s821_s14   ;;  %s633_s13 = sphi %s668_s13, %s820_s13   ;;  %s629_s12 = sphi %s666_s12, %s819_s12   ;;  %s131_s18 = int_to_ptr.hbm [resolvable:$true] %s130_s18 }
   0x7   : > { %p396_p0 = scmp.ge.s32.totalorder %s641_s15, 1  ;;  %p41_p1 = scmp.eq.s32.totalorder %s690_s19, 0 }
   0x8   : > { %p119_p2 = scmp.lt.s32.totalorder %s641_s15, 3  ;;  %s643_s21 = smov [#allocation5]  }
   0x9   : > { %s132_s22 = sshll.u32 %s643_s21, 4  ;;  %s644_s23 = smov 64   ;;  %s133_s22 = int_to_ptr.vmem [resolvable:$true] %s132_s22 }
   0xa   : > { %p695_p3 = pnand %p396_p0, %p119_p2  ;;  %s645_s24 = smov 4  }
   0xb   : > { %s395_s25 = sadd.s32 4294967294, %s641_s15   ;;  %s706_s26 = sadd.s32 1, %s641_s15  }
   0xc   : > { %p457_p4 = pneg %p695_p3  ;;  %s27_s27 = sadd.s32 1, %s637_s14 }
   0xd   : > { %s24_s28 = ssub.s32 %s641_s15, %s706_s26  ;;  %p34_p7 = scmp.ne.s32.totalorder %s637_s14, %s633_s13 }
   0xe   : > { %p458_p6 = pnand %p457_p4, %p41_p1  ;;  %p25_p8 = scmp.eq.s32.totalorder %s24_s28, 0 }
   0xf   : > { %p35_p9 = scmp.eq.s32.totalorder %s641_s15, 0  ;;  %p40_p10 = scmp.ne.s32.totalorder %s633_s13, %s629_s12 }
  0x10   : > { %460 = dma.hbm_to_vmem [thread:$0]  (!%p458_p6), %s131_s18, 1024, %s133_s22, [#allocation6], %s644_s23, %s644_s23, %s645_s24  }
  0x11   : > { %p106_p11 = scmp.eq.s32.totalorder %s690_s19, 1  ;;  %p722_p12 = por %p41_p1, %p40_p10 }
  0x12   : > { %s718_s29 = scalar_select %p25_p8, %s637_s14, %s27_s27  }
  0x13   : > { %p726_p13 = por %p106_p11, %p34_p7  ;;  %p112_p0 = scmp.eq.s32.totalorder %s395_s25, 1 }
  0x14   : > { %p36_p2 = por %p35_p9, %p34_p7  ;;  %s149_s5 = sand.u32 1, %s637_s14  }
  0x15   : > { %p731_p4 = por %p112_p0, %p40_p10  ;;  %p470_p6 = scmp.lt.s32.totalorder %s641_s15, 2 }
  0x16   : > { %s399_s7 = sshll.u32 %s149_s5, 3  ;;  %s400_s8 = sshll.u32 %s641_s15, 3 }
  0x17   : > { %s157_s11 = scalar_lea.hbm %s809_s0, %s400_s8  ;;  %s153_s17 = scalar_lea.vmem [#allocation2], %s399_s7 }
  0x18   : > { %s159_s16 = sshll.u32 %s157_s11, 4  ;;  %s161_s18 = sshll.u32 %s153_s17, 4  ;;  %s160_s16 = int_to_ptr.hbm [resolvable:$true] %s159_s16  ;;  %s162_s18 = int_to_ptr.vmem [resolvable:$true] %s161_s18 }
  0x19   : > { %p740_p8 = pnand %p470_p6, %p36_p2  ;;  %s150_s22 = scalar_lea.sflag [#allocation3], %s149_s5 }
  0x1a   : > { %s541_s23 = sshra.s32 %s160_s16, 4  ;;  %s548_s28 = scalar_lea.hbm %s809_s0, 16  ;;  %s542_s23 = int_to_ptr.hbm [resolvable:$true] %s541_s23 }
  0x1b   : > { %s543_s24 = scalar_lea.hbm %s542_s23, 8  ;;  %p545_p9 = pneg %p740_p8 }
  0x1c   : > { %p544_p7 = scmp.ne.s32.totalorder %s542_s23, %s543_s24  ;;  %p549_p0 = scmp.lt.s32.totalorder %s542_s23, %s809_s0 }
  0x1d   : > { %p550_p2 = scmp.lt.s32.totalorder %s548_s28, %s543_s24 }
  0x1e   : > { %p546_p10 = pnand %p545_p9, %p544_p7 }
  0x1f   : > { %p551_p6 = por %p550_p2, %p549_p0 }
  0x20   : > { %p547_p11 = pneg %p546_p10 }
  0x22   : > { %p552_p5 = pnand %p551_p6, %p547_p11 }
  0x24   : > { %555 = shalt.err (!%p552_p5)
}
  0x25   : > { %464 = dma.hbm_to_vmem [thread:$0]  (!%p740_p8), %s160_s16, 128, %s162_s18, %s150_s22  }
  0x26   : > { %170 = sbr.rel (%p695_p3) target bundleno = 234 (0xea), region = 32  ;;  %s757_s5 = sand.u32 (!%p695_p3), 1, %s633_s13  }
  0x27   : > { %s402_s9 = sshll.u32 (!%p695_p3), %s757_s5, 3  ;;  %s173_s10 = scalar_lea.sflag (!%p695_p3), [#allocation3], %s757_s5 }
  0x28   : > { %s176_s11 = scalar_lea.vmem (!%p695_p3), [#allocation2], %s402_s9 }
  0x2b   : > { %616 = dma.done.wait (%p722_p12), %s173_s10, 128  }
  0x2c   : > { %618 = vsyncadd (%p722_p12), %s173_s10, 4294967168 }
  0x2d   : > { %620 = dma.done.wait (%p41_p1), [#allocation6], 1024  }
  0x2e   : > { %622 = vsyncadd (%p41_p1), [#allocation6], 4294966272  ;;  %v448_v0 = vld [vmem:[#allocation5 + $0x38] sm:$0xff]  ;;  %v447_v1 = vld [vmem:[#allocation5 + $0x30] sm:$0xff]  ;;  %s438_s16 = sshll.u32 %s690_s19, 3  ;;  %s204_s22 = scalar_lea.vmem [#allocation7], %s402_s9 }
  0x2f   : > { %275 = vmatpush.bf16.msra.mxu0 %v448_v0  ;;  %v446_v2 = vld [vmem:[#allocation5 + $0x28] sm:$0xff]  ;;  %v445_v3 = vld [vmem:[#allocation5 + $0x20] sm:$0xff]  ;;  %v444_v4 = vld [vmem:[#allocation5 + $0x18] sm:$0xff]  ;;  %s310_s21 = scalar_lea.hbm %s812_s3, %s438_s16  ;;  %s312_s23 = sshll.u32 %s204_s22, 4  ;;  %s313_s23 = int_to_ptr.vmem [resolvable:$true] %s312_s23 }
  0x30   : > { %v443_v5 = vld [vmem:[#allocation5 + $0x10] sm:$0xff]  ;;  %v442_v6 = vld [vmem:[#allocation5 + $0x8] sm:$0xff]  ;;  %v441_v7 = vld [vmem:[#allocation5] sm:$0xff]  ;;  %s314_s24 = sshll.u32 %s310_s21, 4  ;;  %s300_s25 = scalar_lea.sflag [#allocation4], %s757_s5  ;;  %s315_s24 = int_to_ptr.hbm [resolvable:$true] %s314_s24 }
  0x31   : > { %v205_v8 = vld [vmem:[%s176_s11] sm:$0xff]  ;;  %s585_s27 = sshra.s32 %s315_s24, 4  ;;  %s591_s8 = scalar_lea.hbm %s812_s3, 16  ;;  %s586_s27 = int_to_ptr.hbm [resolvable:$true] %s585_s27 }
  0x32   : > { %v206_v9 = vpack.c.bf16 %v205_v8, %v205_v8  ;;  %v508_v10 = vld [vmem:[%s811_s2] ss:$0 sm:$0xff]  ;;  %s587_s19 = scalar_lea.hbm %s586_s27, 8  ;;  %p592_p12 = scmp.lt.s32.totalorder %s586_s27, %s812_s3 }
  0x33   : > { %276 = vmatpush.bf16.msra.mxu0 %v447_v1  ;;  %p588_p1 = scmp.ne.s32.totalorder %s586_s27, %s587_s19  ;;  %p593_p8 = scmp.lt.s32.totalorder %s591_s8, %s587_s19 }
  0x35   : > { %p589_p3 = pnand %p588_p1, %p726_p13  ;;  %p594_p7 = por %p593_p8, %p592_p12 }
  0x37   : > { %277 = vmatpush.bf16.msra.mxu0 %v446_v2  ;;  %p590_p5 = pneg %p589_p3 }
  0x39   : > { %p595_p9 = pnand %p594_p7, %p590_p5 }
  0x3b   : > { %278 = vmatpush.bf16.msra.mxu0 %v445_v3 }
  0x3f   : > { %279 = vmatpush.bf16.msra.mxu0 %v444_v4 }
  0x43   : > { %280 = vmatpush.bf16.msra.mxu0 %v443_v5 }
  0x47   : > { %281 = vmatpush.bf16.msra.mxu0 %v442_v6 }
  0x4b   : > { %282 = vmatpush.bf16.msra.mxu0 %v441_v7 }
  0x4e   : > { %283 = vmatmul.bf16.vlgmr.msra.gmra.mxu0 %v206_v9 }
  0xcb   : > { %v284_v11 = vpop.f32.mrf.mxu0 }
  0xcc   : > { %v285_v12 = vadd.f32 %v508_v10, %v284_v11 }
  0xce   : > { %v288_v13 = vmul.f32 %v285_v12, %v285_v12 }
  0xd0   : > { %v289_v14 = vmul.f32 %v288_v13, %v285_v12 }
  0xd2   : > { %v290_v15 = vmul.f32 0.044715, %v289_v14 }
  0xd3   : > { %v286_v16 = vpop.f32.mrf.mxu0 }
  0xd4   : > { %v291_v17 = vadd.f32 %v290_v15, %v285_v12 }
  0xd6   : > { %v292_v18 = vmul.f32 0.7978846, %v291_v17 }
  0xd8   : > { %509 = vtanh.f32 %v292_v18 }
  0xde   : > { %v510_v19 = vpop.eup %509 }
  0xdf   : > { %v294_v20 = vadd.f32 1.0, %v510_v19 }
  0xe1   : > { %v295_v21 = vmul.f32 0.5, %v294_v20 }
  0xe3   : > { %v296_v22 = vmul.f32 %v295_v21, %v285_v12 }
  0xe5   : > { %v297_v23 = vadd.f32 %v296_v22, %v205_v8 }
  0xe7   : > { %298 = vst [vmem:[%s204_s22] sm:$0xff] %v297_v23 }
  0xe8   : > { %598 = shalt.err (!%p595_p9)
}
  0xe9   : > { %455 = dma.vmem_to_hbm [thread:$0]  (%p726_p13), %s313_s23, 128, %s315_s24, %s300_s25  }
  0xea PF: > { %s326_s5 = sand.u32 1, %s629_s12   ;;  %p818_p10 = scmp.ge.s32.totalorder %s641_s15, 2 }
  0xeb   : > { %s327_s11 = scalar_lea.sflag [#allocation4], %s326_s5 }
  0xec   : > { %p466_p11 = pnand %p818_p10, %p731_p4 }
  0xee   : > { %p467_p0 = pneg %p466_p11 }
  0xf0   : > { %624 = dma.done.wait (%p467_p0), %s327_s11, 128  }
  0xf1   : > { %626 = vsyncadd (%p467_p0), %s327_s11, 4294967168  ;;  %p17_p2 = scmp.ge.s32.totalorder %s706_s26, 4   ;;  %s819_s12 = smov %s633_s13 }
  0xf2   : > { %s820_s13 = smov %s637_s14  ;;  %s821_s14 = smov %s718_s29 }
  0xf3   : > { %s822_s15 = smov %s706_s26  ;;  %19 = sbr.rel (!%p17_p2) target bundleno = 6 (0x6), region = 81 }
  0xf8   :  { %333 = vsyncpa [#allocation3], 1 }
  0xf9   :  { %335 = vsyncpa [#allocation3 + $0x1], 1 }
  0xfa   :  { %336 = vsyncpa [#allocation6], 1 }
  0xfb   :  { %337 = vsyncpa [#allocation4], 1 }
  0xfc   :  { %339 = vsyncpa [#allocation4 + $0x1], 1 }

</bundles_post_ra>
